<compile_context>
chip_gen: v7x
topology: tpu7x:2x2x1
jax: 0.10.0
libtpu: 0.0.40
codegen_flags: <defaults>
</compile_context>

<pallas_src>
import functools

import jax
import jax.numpy as jnp
from jax.experimental import pallas as pl
from jax.experimental.pallas import tpu as pltpu

VMEM_SPEC = pl.BlockSpec(memory_space=pltpu.MemorySpace.VMEM)


# ---------------------------------------------------------------------------
# Single fused forward kernel.
# ---------------------------------------------------------------------------
def _fused_forward_kernel(*refs, n_layers, n_mlp, residuals):
    it = iter(refs)
    feat_ref = next(it)          # [N, in_dim]  bf16
    a_ref = next(it)             # [N, N]       f32 (row-normalized adjacency)
    emb_w_ref = next(it)         # [in_dim, hidden] bf16
    emb_b_ref = next(it)         # [1, hidden]  f32
    layer_refs = [(next(it), next(it)) for _ in range(n_layers)]  # (w_cat, vecs)
    mlp_refs = [(next(it), next(it)) for _ in range(n_mlp)]       # (w, b)
    o_ref = next(it)             # [N, n_classes]

    # embedding_h (in_feat_dropout == identity at inference); bf16 operands,
    # f32 accumulation on the MXU.
    h = jnp.dot(feat_ref[...], emb_w_ref[...],
                preferred_element_type=jnp.float32) + emb_b_ref[...]

    a = a_ref[...]
    for li in range(n_layers):
        w_cat_ref, vec_ref = layer_refs[li]
        d_in = w_cat_ref.shape[0] // 2
        # mean aggregation over incoming edges: c = A_norm @ h
        c = jnp.dot(a, h, preferred_element_type=jnp.float32)
        # NodeApply: Linear(concat(h, c)) == h @ W_self + c @ W_neigh + b.
        # Static, sublane-aligned slices of the packed weight ref (no concat).
        z = (jnp.dot(h, w_cat_ref[0:d_in, :],
                     preferred_element_type=jnp.float32)
             + jnp.dot(c, w_cat_ref[d_in:2 * d_in, :],
                       preferred_element_type=jnp.float32)
             + vec_ref[0:1, :])
        # F.normalize(z, p=2, dim=1):  z / max(||z||, 1e-12)
        #   == z * rsqrt(max(sum(z^2), 1e-24))   (EUP rsqrt, no VPU divide)
        ss = jnp.sum(z * z, axis=1, keepdims=True)
        z = z * jax.lax.rsqrt(jnp.maximum(ss, 1e-24))
        # activation = relu
        z = jnp.maximum(z, 0.0)
        # BatchNorm1d (eval mode), pre-folded on host into scale/shift
        z = z * vec_ref[1:2, :] + vec_ref[2:3, :]
        if residuals[li]:
            z = h + z
        h = z

    # MLPReadout: out_dim -> out_dim//2 -> out_dim//4 -> n_classes
    y = h
    for mi in range(n_mlp):
        w_ref, b_ref = mlp_refs[mi]
        y = jnp.dot(y, w_ref[...],
                    preferred_element_type=jnp.float32) + b_ref[...]
        if mi < n_mlp - 1:
            y = jnp.maximum(y, 0.0)
    o_ref[...] = y


def graphsage_net_forward(packed, feat, a_norm):
    """Full forward pass in one pallas_call. `packed` from pack_params()."""
    n = feat.shape[0]
    n_classes = packed["mlp"][-1][0].shape[1]

    arrays = [feat.astype(jnp.bfloat16), a_norm.astype(jnp.float32),
              packed["emb_w"], packed["emb_b"]]
    residuals = []
    for lp in packed["layers"]:
        arrays += [lp["w_cat"], lp["vecs"]]
        residuals.append(lp["residual"])
    for w, b in packed["mlp"]:
        arrays += [w, b]

    kernel = functools.partial(
        _fused_forward_kernel,
        n_layers=len(packed["layers"]),
        n_mlp=len(packed["mlp"]),
        residuals=tuple(residuals),
    )
    return pl.pallas_call(
        kernel,
        out_shape=jax.ShapeDtypeStruct((n, n_classes), jnp.float32),
        in_specs=[VMEM_SPEC] * len(arrays),
        out_specs=VMEM_SPEC,
    )(*arrays)


# ---------------------------------------------------------------------------
# Deterministic parameter construction (shapes from GraphSageNet.__init__)
# and host-side packing (BN fold, weight stacking, bf16 embedding weight).
# ---------------------------------------------------------------------------
def _uniform(key, shape, fan_in):
    lim = 1.0 / jnp.sqrt(jnp.float32(fan_in))
    return jax.random.uniform(key, shape, jnp.float32, -lim, lim)


def init_params(key, in_dim=1024, hidden=32, out_dim=32,
                n_layers=2, n_classes=2):
    keys = jax.random.split(key, 64)
    ki = iter(range(64))
    params = {}
    # embedding_h: Linear(1024, hidden)
    params["emb_w"] = _uniform(keys[next(ki)], (in_dim, hidden), in_dim)
    params["emb_b"] = _uniform(keys[next(ki)], (1, hidden), in_dim)

    # GraphSageLayers: (n_layers-1) of hidden->hidden, then hidden->out_dim
    layer_dims = [(hidden, hidden)] * (n_layers - 1) + [(hidden, out_dim)]
    layers = []
    for d_in, d_out in layer_dims:
        fan = 2 * d_in  # NodeApply: Linear(2*in_feats, out_feats)
        lp = {
            "w_self": _uniform(keys[next(ki)], (d_in, d_out), fan),
            "w_neigh": _uniform(keys[next(ki)], (d_in, d_out), fan),
            "b": _uniform(keys[next(ki)], (1, d_out), fan),
            "gamma": 1.0 + 0.1 * jax.random.normal(keys[next(ki)], (1, d_out)),
            "beta": 0.1 * jax.random.normal(keys[next(ki)], (1, d_out)),
            "mean": 0.1 * jax.random.normal(keys[next(ki)], (1, d_out)),
            "var": 1.0 + 0.1 * jax.random.uniform(keys[next(ki)], (1, d_out)),
            "residual": d_in == d_out,
        }
        layers.append(lp)
    params["layers"] = layers

    # MLPReadout(out_dim, n_classes), L=2: out -> out//2 -> out//4 -> n_classes
    mlp = []
    dims = [out_dim, out_dim // 2, out_dim // 4, n_classes]
    for d_in, d_out in zip(dims[:-1], dims[1:]):
        w = _uniform(keys[next(ki)], (d_in, d_out), d_in)
        b = _uniform(keys[next(ki)], (1, d_out), d_in)
        mlp.append((w, b))
    params["mlp"] = mlp
    return params


def pack_params(raw):
    """Fold BatchNorm, stack NodeApply weights, cast embedding weight to bf16."""
    packed = {
        "emb_w": raw["emb_w"].astype(jnp.bfloat16),
        "emb_b": raw["emb_b"],
        "layers": [],
        "mlp": raw["mlp"],
    }
    for lp in raw["layers"]:
        scale = lp["gamma"] * jax.lax.rsqrt(lp["var"] + 1e-5)
        shift = lp["beta"] - lp["mean"] * scale
        packed["layers"].append({
            # rows [0:d_in] = W_self, rows [d_in:2*d_in] = W_neigh
            "w_cat": jnp.concatenate([lp["w_self"], lp["w_neigh"]], axis=0),
            # rows: [bias, bn_scale, bn_shift]
            "vecs": jnp.concatenate([lp["b"], scale, shift], axis=0),
            "residual": lp["residual"],
        })
    return packed


if __name__ == "__main__":
    N = 16            # number of graph nodes
    IN_DIM = 1024     # in_dim_node fixed in the module
    HIDDEN = 32
    OUT_DIM = 32
    N_LAYERS = 2

    key = jax.random.PRNGKey(0)
    kx, ka = jax.random.split(key)
    feat = jax.random.normal(kx, (N, IN_DIM), jnp.float32)

    # Random graph with self-loops; row-normalize for the mean aggregator.
    adj = (jax.random.uniform(ka, (N, N)) < 0.4).astype(jnp.float32)
    adj = jnp.maximum(adj, jnp.eye(N, dtype=jnp.float32))
    a_norm = adj / jnp.sum(adj, axis=1, keepdims=True)

    raw_params = init_params(jax.random.PRNGKey(42), IN_DIM, HIDDEN, OUT_DIM,
                             N_LAYERS, n_classes=2)
    packed = pack_params(raw_params)

    out = graphsage_net_forward(packed, feat, a_norm)
    out = jax.block_until_ready(out)
    assert out.shape == (N, 2) and out.dtype == jnp.float32
    print("KERNEL_OK")
</pallas_src>

<mosaic_0001>
module attributes {stable_mosaic.version = 11 : i64} {
  func.func @_fused_forward_kernel(%arg0: memref<16x1024xbf16, #tpu.memory_space<vmem>>, %arg1: memref<16x16xf32, #tpu.memory_space<vmem>>, %arg2: memref<1024x32xbf16, #tpu.memory_space<vmem>>, %arg3: memref<1x32xf32, #tpu.memory_space<vmem>>, %arg4: memref<64x32xf32, #tpu.memory_space<vmem>>, %arg5: memref<3x32xf32, #tpu.memory_space<vmem>>, %arg6: memref<64x32xf32, #tpu.memory_space<vmem>>, %arg7: memref<3x32xf32, #tpu.memory_space<vmem>>, %arg8: memref<32x16xf32, #tpu.memory_space<vmem>>, %arg9: memref<1x16xf32, #tpu.memory_space<vmem>>, %arg10: memref<16x8xf32, #tpu.memory_space<vmem>>, %arg11: memref<1x8xf32, #tpu.memory_space<vmem>>, %arg12: memref<8x2xf32, #tpu.memory_space<vmem>>, %arg13: memref<1x2xf32, #tpu.memory_space<vmem>>, %arg14: memref<16x2xf32, #tpu.memory_space<vmem>>) attributes {dimension_semantics = [], scalar_prefetch = 0 : i64, scratch_operands = 0 : i64, tpu.core_type = #tpu.core_type<tc>} {
    %c0 = arith.constant 0 : index
    %c0_0 = arith.constant 0 : index
    %0 = vector.load %arg0[%c0, %c0_0] : memref<16x1024xbf16, #tpu.memory_space<vmem>>, vector<16x1024xbf16>
    %c0_1 = arith.constant 0 : index
    %c0_2 = arith.constant 0 : index
    %1 = vector.load %arg2[%c0_1, %c0_2] : memref<1024x32xbf16, #tpu.memory_space<vmem>>, vector<1024x32xbf16>
    %cst = arith.constant dense<0.000000e+00> : vector<16x32xf32>
    %2 = tpu.matmul %0, %1, %cst {dimension_numbers = #tpu.dot_dimension_numbers<[1], [0], [0], [1], [0, 0, 1, 1], [], []>} : vector<16x1024xbf16>, vector<1024x32xbf16>, vector<16x32xf32> -> vector<16x32xf32>
    %c0_3 = arith.constant 0 : index
    %c0_4 = arith.constant 0 : index
    %3 = vector.load %arg3[%c0_3, %c0_4] : memref<1x32xf32, #tpu.memory_space<vmem>>, vector<1x32xf32>
    %4 = vector.broadcast %3 : vector<1x32xf32> to vector<16x32xf32>
    %5 = arith.addf %2, %4 : vector<16x32xf32>
    %c0_5 = arith.constant 0 : index
    %c0_6 = arith.constant 0 : index
    %6 = vector.load %arg1[%c0_5, %c0_6] : memref<16x16xf32, #tpu.memory_space<vmem>>, vector<16x16xf32>
    %cst_7 = arith.constant dense<0.000000e+00> : vector<16x32xf32>
    %7 = tpu.matmul %6, %5, %cst_7 {dimension_numbers = #tpu.dot_dimension_numbers<[1], [0], [0], [1], [0, 0, 1, 1], [], []>} : vector<16x16xf32>, vector<16x32xf32>, vector<16x32xf32> -> vector<16x32xf32>
    %c0_8 = arith.constant 0 : index
    %c0_9 = arith.constant 0 : index
    %8 = vector.load %arg4[%c0_8, %c0_9] : memref<64x32xf32, #tpu.memory_space<vmem>>, vector<32x32xf32>
    %cst_10 = arith.constant dense<0.000000e+00> : vector<16x32xf32>
    %9 = tpu.matmul %5, %8, %cst_10 {dimension_numbers = #tpu.dot_dimension_numbers<[1], [0], [0], [1], [0, 0, 1, 1], [], []>} : vector<16x32xf32>, vector<32x32xf32>, vector<16x32xf32> -> vector<16x32xf32>
    %c32 = arith.constant 32 : index
    %c0_11 = arith.constant 0 : index
    %10 = vector.load %arg4[%c32, %c0_11] : memref<64x32xf32, #tpu.memory_space<vmem>>, vector<32x32xf32>
    %cst_12 = arith.constant dense<0.000000e+00> : vector<16x32xf32>
    %11 = tpu.matmul %7, %10, %cst_12 {dimension_numbers = #tpu.dot_dimension_numbers<[1], [0], [0], [1], [0, 0, 1, 1], [], []>} : vector<16x32xf32>, vector<32x32xf32>, vector<16x32xf32> -> vector<16x32xf32>
    %12 = arith.addf %9, %11 : vector<16x32xf32>
    %c0_13 = arith.constant 0 : index
    %c0_14 = arith.constant 0 : index
    %13 = vector.load %arg5[%c0_13, %c0_14] : memref<3x32xf32, #tpu.memory_space<vmem>>, vector<1x32xf32>
    %14 = vector.broadcast %13 : vector<1x32xf32> to vector<16x32xf32>
    %15 = arith.addf %12, %14 : vector<16x32xf32>
    %16 = arith.mulf %15, %15 : vector<16x32xf32>
    %cst_15 = arith.constant dense<0.000000e+00> : vector<16xf32>
    %17 = vector.multi_reduction <add>, %16, %cst_15 [1] : vector<16x32xf32> to vector<16xf32>
    %18 = vector.shape_cast %17 : vector<16xf32> to vector<16x1xf32>
    %cst_16 = arith.constant 1.000000e-24 : f32
    %19 = vector.broadcast %cst_16 : f32 to vector<16x1xf32>
    %20 = arith.maximumf %18, %19 : vector<16x1xf32>
    %21 = math.rsqrt %20 : vector<16x1xf32>
    %22 = vector.broadcast %21 : vector<16x1xf32> to vector<16x32xf32>
    %23 = arith.mulf %15, %22 : vector<16x32xf32>
    %cst_17 = arith.constant 0.000000e+00 : f32
    %24 = vector.broadcast %cst_17 : f32 to vector<16x32xf32>
    %25 = arith.maximumf %23, %24 : vector<16x32xf32>
    %c1 = arith.constant 1 : index
    %c0_18 = arith.constant 0 : index
    %26 = vector.load %arg5[%c1, %c0_18] : memref<3x32xf32, #tpu.memory_space<vmem>>, vector<1x32xf32>
    %27 = vector.broadcast %26 : vector<1x32xf32> to vector<16x32xf32>
    %28 = arith.mulf %25, %27 : vector<16x32xf32>
    %c2 = arith.constant 2 : index
    %c0_19 = arith.constant 0 : index
    %29 = vector.load %arg5[%c2, %c0_19] : memref<3x32xf32, #tpu.memory_space<vmem>>, vector<1x32xf32>
    %30 = vector.broadcast %29 : vector<1x32xf32> to vector<16x32xf32>
    %31 = arith.addf %28, %30 : vector<16x32xf32>
    %32 = arith.addf %5, %31 : vector<16x32xf32>
    %cst_20 = arith.constant dense<0.000000e+00> : vector<16x32xf32>
    %33 = tpu.matmul %6, %32, %cst_20 {dimension_numbers = #tpu.dot_dimension_numbers<[1], [0], [0], [1], [0, 0, 1, 1], [], []>} : vector<16x16xf32>, vector<16x32xf32>, vector<16x32xf32> -> vector<16x32xf32>
    %c0_21 = arith.constant 0 : index
    %c0_22 = arith.constant 0 : index
    %34 = vector.load %arg6[%c0_21, %c0_22] : memref<64x32xf32, #tpu.memory_space<vmem>>, vector<32x32xf32>
    %cst_23 = arith.constant dense<0.000000e+00> : vector<16x32xf32>
    %35 = tpu.matmul %32, %34, %cst_23 {dimension_numbers = #tpu.dot_dimension_numbers<[1], [0], [0], [1], [0, 0, 1, 1], [], []>} : vector<16x32xf32>, vector<32x32xf32>, vector<16x32xf32> -> vector<16x32xf32>
    %c32_24 = arith.constant 32 : index
    %c0_25 = arith.constant 0 : index
    %36 = vector.load %arg6[%c32_24, %c0_25] : memref<64x32xf32, #tpu.memory_space<vmem>>, vector<32x32xf32>
    %cst_26 = arith.constant dense<0.000000e+00> : vector<16x32xf32>
    %37 = tpu.matmul %33, %36, %cst_26 {dimension_numbers = #tpu.dot_dimension_numbers<[1], [0], [0], [1], [0, 0, 1, 1], [], []>} : vector<16x32xf32>, vector<32x32xf32>, vector<16x32xf32> -> vector<16x32xf32>
    %38 = arith.addf %35, %37 : vector<16x32xf32>
    %c0_27 = arith.constant 0 : index
    %c0_28 = arith.constant 0 : index
    %39 = vector.load %arg7[%c0_27, %c0_28] : memref<3x32xf32, #tpu.memory_space<vmem>>, vector<1x32xf32>
    %40 = vector.broadcast %39 : vector<1x32xf32> to vector<16x32xf32>
    %41 = arith.addf %38, %40 : vector<16x32xf32>
    %42 = arith.mulf %41, %41 : vector<16x32xf32>
    %cst_29 = arith.constant dense<0.000000e+00> : vector<16xf32>
    %43 = vector.multi_reduction <add>, %42, %cst_29 [1] : vector<16x32xf32> to vector<16xf32>
    %44 = vector.shape_cast %43 : vector<16xf32> to vector<16x1xf32>
    %cst_30 = arith.constant 1.000000e-24 : f32
    %45 = vector.broadcast %cst_30 : f32 to vector<16x1xf32>
    %46 = arith.maximumf %44, %45 : vector<16x1xf32>
    %47 = math.rsqrt %46 : vector<16x1xf32>
    %48 = vector.broadcast %47 : vector<16x1xf32> to vector<16x32xf32>
    %49 = arith.mulf %41, %48 : vector<16x32xf32>
    %cst_31 = arith.constant 0.000000e+00 : f32
    %50 = vector.broadcast %cst_31 : f32 to vector<16x32xf32>
    %51 = arith.maximumf %49, %50 : vector<16x32xf32>
    %c1_32 = arith.constant 1 : index
    %c0_33 = arith.constant 0 : index
    %52 = vector.load %arg7[%c1_32, %c0_33] : memref<3x32xf32, #tpu.memory_space<vmem>>, vector<1x32xf32>
    %53 = vector.broadcast %52 : vector<1x32xf32> to vector<16x32xf32>
    %54 = arith.mulf %51, %53 : vector<16x32xf32>
    %c2_34 = arith.constant 2 : index
    %c0_35 = arith.constant 0 : index
    %55 = vector.load %arg7[%c2_34, %c0_35] : memref<3x32xf32, #tpu.memory_space<vmem>>, vector<1x32xf32>
    %56 = vector.broadcast %55 : vector<1x32xf32> to vector<16x32xf32>
    %57 = arith.addf %54, %56 : vector<16x32xf32>
    %58 = arith.addf %32, %57 : vector<16x32xf32>
    %c0_36 = arith.constant 0 : index
    %c0_37 = arith.constant 0 : index
    %59 = vector.load %arg8[%c0_36, %c0_37] : memref<32x16xf32, #tpu.memory_space<vmem>>, vector<32x16xf32>
    %cst_38 = arith.constant dense<0.000000e+00> : vector<16x16xf32>
    %60 = tpu.matmul %58, %59, %cst_38 {dimension_numbers = #tpu.dot_dimension_numbers<[1], [0], [0], [1], [0, 0, 1, 1], [], []>} : vector<16x32xf32>, vector<32x16xf32>, vector<16x16xf32> -> vector<16x16xf32>
    %c0_39 = arith.constant 0 : index
    %c0_40 = arith.constant 0 : index
    %61 = vector.load %arg9[%c0_39, %c0_40] : memref<1x16xf32, #tpu.memory_space<vmem>>, vector<1x16xf32>
    %62 = vector.broadcast %61 : vector<1x16xf32> to vector<16x16xf32>
    %63 = arith.addf %60, %62 : vector<16x16xf32>
    %cst_41 = arith.constant 0.000000e+00 : f32
    %64 = vector.broadcast %cst_41 : f32 to vector<16x16xf32>
    %65 = arith.maximumf %63, %64 : vector<16x16xf32>
    %c0_42 = arith.constant 0 : index
    %c0_43 = arith.constant 0 : index
    %66 = vector.load %arg10[%c0_42, %c0_43] : memref<16x8xf32, #tpu.memory_space<vmem>>, vector<16x8xf32>
    %cst_44 = arith.constant dense<0.000000e+00> : vector<16x8xf32>
    %67 = tpu.matmul %65, %66, %cst_44 {dimension_numbers = #tpu.dot_dimension_numbers<[1], [0], [0], [1], [0, 0, 1, 1], [], []>} : vector<16x16xf32>, vector<16x8xf32>, vector<16x8xf32> -> vector<16x8xf32>
    %c0_45 = arith.constant 0 : index
    %c0_46 = arith.constant 0 : index
    %68 = vector.load %arg11[%c0_45, %c0_46] : memref<1x8xf32, #tpu.memory_space<vmem>>, vector<1x8xf32>
    %69 = vector.broadcast %68 : vector<1x8xf32> to vector<16x8xf32>
    %70 = arith.addf %67, %69 : vector<16x8xf32>
    %cst_47 = arith.constant 0.000000e+00 : f32
    %71 = vector.broadcast %cst_47 : f32 to vector<16x8xf32>
    %72 = arith.maximumf %70, %71 : vector<16x8xf32>
    %c0_48 = arith.constant 0 : index
    %c0_49 = arith.constant 0 : index
    %73 = vector.load %arg12[%c0_48, %c0_49] : memref<8x2xf32, #tpu.memory_space<vmem>>, vector<8x2xf32>
    %cst_50 = arith.constant dense<0.000000e+00> : vector<16x2xf32>
    %74 = tpu.matmul %72, %73, %cst_50 {dimension_numbers = #tpu.dot_dimension_numbers<[1], [0], [0], [1], [0, 0, 1, 1], [], []>} : vector<16x8xf32>, vector<8x2xf32>, vector<16x2xf32> -> vector<16x2xf32>
    %c0_51 = arith.constant 0 : index
    %c0_52 = arith.constant 0 : index
    %75 = vector.load %arg13[%c0_51, %c0_52] : memref<1x2xf32, #tpu.memory_space<vmem>>, vector<1x2xf32>
    %76 = vector.broadcast %75 : vector<1x2xf32> to vector<16x2xf32>
    %77 = arith.addf %74, %76 : vector<16x2xf32>
    %c0_53 = arith.constant 0 : index
    %c0_54 = arith.constant 0 : index
    %78 = vector.load %arg14[%c0_53, %c0_54] : memref<16x2xf32, #tpu.memory_space<vmem>>, vector<16x2xf32>
    tpu.vector_store %arg14[%c0_53, %c0_54], %77 {strides = array<i32>} : memref<16x2xf32, #tpu.memory_space<vmem>>, vector<16x2xf32>,
    return
  }
}

</mosaic_0001>

<bundles_post_ra>
// kernel: tpu_custom_call.1
= control target key start
LH: loop header
LB: loop body
LE: loop exit
PB: predicated region body
PF: predicated region fallthrough
CT: control target
= control target key end

     0   :  { %vm781_vm0 = vcmask 130048   ;;  %vm871_vm1 = vcmask 261120   ;;  %vm1551_vm2 = vcmask 64512   ;;  %vm1633_vm3 = vcmask 15360   ;;  %s2518_s2 = inlined_call_operand.vmem [shape: bf16[1024,32], index: 2, kind: input, shape index: {}]   ;;  %s2519_s0 = inlined_call_operand.vmem [shape: bf16[16,1024], index: 0, kind: input, shape index: {}]   ;;  %s2520_s1 = inlined_call_operand.vmem [shape: f32[16,16], index: 1, kind: input, shape index: {}]   ;;  %s2521_s4 = inlined_call_operand.vmem [shape: f32[64,32], index: 4, kind: input, shape index: {}]   ;;  %s2522_s3 = inlined_call_operand.vmem [shape: f32[1,32], index: 3, kind: input, shape index: {}]   ;;  %s2523_s5 = inlined_call_operand.vmem [shape: f32[3,32], index: 5, kind: input, shape index: {}]   ;;  %s2524_s6 = inlined_call_operand.vmem [shape: f32[64,32], index: 6, kind: input, shape index: {}]   ;;  %s2525_s7 = inlined_call_operand.vmem [shape: f32[3,32], index: 7, kind: input, shape index: {}]   ;;  %s2526_s8 = inlined_call_operand.vmem [shape: f32[32,16], index: 8, kind: input, shape index: {}]   ;;  %s2527_s10 = inlined_call_operand.vmem [shape: f32[16,8], index: 10, kind: input, shape index: {}]   ;;  %s2528_s9 = inlined_call_operand.vmem [shape: f32[1,16], index: 9, kind: input, shape index: {}]   ;;  %s2529_s12 = inlined_call_operand.vmem [shape: f32[8,2], index: 12, kind: input, shape index: {}]   ;;  %s2530_s11 = inlined_call_operand.vmem [shape: f32[1,8], index: 11, kind: input, shape index: {}]   ;;  %s2531_s13 = inlined_call_operand.vmem [shape: f32[1,2], index: 13, kind: input, shape index: {}]   ;;  %s2532_s14 = inlined_call_operand.vmem [shape: f32[16,2], index: 14, kind: output, shape index: {}]  }
   0x1   :  { %v2010_v0 = vld [vmem:[%s2518_s2 + $0x40] sm:$0xff]   ;;  %v2014_v4 = vld [vmem:[%s2518_s2 + $0x48] sm:$0xff]   ;;  %v2018_v8 = vld [vmem:[%s2518_s2 + $0x50] sm:$0xff]  }
   0x2   :  { %v2011_v1 = vld [vmem:[%s2518_s2 + $0xc0] sm:$0xff]   ;;  %1740 = vmatprep.subr.bf16.mxu0 %v2010_v0  ;;  %v2015_v5 = vld [vmem:[%s2518_s2 + $0xc8] sm:$0xff]   ;;  %v2019_v9 = vld [vmem:[%s2518_s2 + $0xd0] sm:$0xff]  }
   0x3   :  { %v2012_v2 = vld [vmem:[%s2518_s2] sm:$0xff]   ;;  %1762 = vmatprep.subr.bf16.mxu1 %v2011_v1  ;;  %v2016_v6 = vld [vmem:[%s2518_s2 + $0x8] sm:$0xff]   ;;  %v2020_v10 = vld [vmem:[%s2518_s2 + $0x10] sm:$0xff]  }
   0x4   :  { %v2013_v3 = vld [vmem:[%s2518_s2 + $0x80] sm:$0xff]   ;;  %1741 = vmatpush3.bf16.msra.mxu0 %v2012_v2  ;;  %v2017_v7 = vld [vmem:[%s2518_s2 + $0x88] sm:$0xff]   ;;  %v2021_v11 = vld [vmem:[%s2518_s2 + $0x90] sm:$0xff]  }
   0x5   :  { %1763 = vmatpush3.bf16.msra.mxu1 %v2013_v3  ;;  %1742 = vmatprep.subr.bf16.mxu0 %v2014_v4  ;;  %v2022_v12 = vld [vmem:[%s2518_s2 + $0x58] sm:$0xff]   ;;  %v2026_v16 = vld [vmem:[%s2518_s2 + $0x60] sm:$0xff]   ;;  %v2030_v20 = vld [vmem:[%s2518_s2 + $0x68] sm:$0xff]  }
   0x6   :  { %1764 = vmatprep.subr.bf16.mxu1 %v2015_v5  ;;  %v2023_v13 = vld [vmem:[%s2518_s2 + $0xd8] sm:$0xff]   ;;  %v2027_v17 = vld [vmem:[%s2518_s2 + $0xe0] sm:$0xff]   ;;  %v2031_v21 = vld [vmem:[%s2518_s2 + $0xe8] sm:$0xff]  }
   0x7   :  { %v2024_v14 = vld [vmem:[%s2518_s2 + $0x18] sm:$0xff]   ;;  %v2028_v18 = vld [vmem:[%s2518_s2 + $0x20] sm:$0xff]   ;;  %v2032_v22 = vld [vmem:[%s2518_s2 + $0x28] sm:$0xff]  }
   0x8   :  { %1743 = vmatpush3.bf16.msra.mxu0 %v2016_v6  ;;  %v2025_v15 = vld [vmem:[%s2518_s2 + $0x98] sm:$0xff]   ;;  %v2029_v19 = vld [vmem:[%s2518_s2 + $0xa0] sm:$0xff]   ;;  %v2033_v23 = vld [vmem:[%s2518_s2 + $0xa8] sm:$0xff]  }
   0x9   :  { %1765 = vmatpush3.bf16.msra.mxu1 %v2017_v7  ;;  %1744 = vmatprep.subr.bf16.mxu0 %v2018_v8  ;;  %v2034_v24 = vld [vmem:[%s2518_s2 + $0x70] sm:$0xff]   ;;  %v2038_v28 = vld [vmem:[%s2518_s2 + $0x78] sm:$0xff]   ;;  %v48_v32 = vld [vmem:[%s2519_s0] sm:$0xff] }
   0xa   :  { %1766 = vmatprep.subr.bf16.mxu1 %v2019_v9  ;;  %v2035_v25 = vld [vmem:[%s2518_s2 + $0xf0] sm:$0xff]   ;;  %v2039_v29 = vld [vmem:[%s2518_s2 + $0xf8] sm:$0xff]   ;;  %v52_v33 = vld [vmem:[%s2519_s0 + $0x20] sm:$0xff] }
   0xb   :  { %v2036_v26 = vld [vmem:[%s2518_s2 + $0x30] sm:$0xff]   ;;  %v2040_v30 = vld [vmem:[%s2518_s2 + $0x38] sm:$0xff]   ;;  %v49_v34 = vld [vmem:[%s2519_s0 + $0x8] sm:$0xff]  ;;  %v1641_v35 = vcombine.low %v48_v32, %v52_v33  ;;  %v1642_v36 = vcombine.high %v48_v32, %v52_v33 }
   0xc   :  { %1745 = vmatpush3.bf16.msra.mxu0 %v2020_v10  ;;  %v2037_v27 = vld [vmem:[%s2518_s2 + $0xb0] sm:$0xff]   ;;  %v2041_v31 = vld [vmem:[%s2518_s2 + $0xb8] sm:$0xff]   ;;  %v53_v37 = vld [vmem:[%s2519_s0 + $0x28] sm:$0xff] }
   0xd   :  { %1767 = vmatpush3.bf16.msra.mxu1 %v2021_v11  ;;  %1746 = vmatprep.subr.bf16.mxu0 %v2022_v12  ;;  %v1643_v38 = vcombine.low %v49_v34, %v53_v37  ;;  %v1644_v39 = vcombine.high %v49_v34, %v53_v37  ;;  %v2042_v40 = vld [vmem:[%s2518_s2 + $0x140] sm:$0xff]   ;;  %v2046_v44 = vld [vmem:[%s2518_s2 + $0x148] sm:$0xff]   ;;  %v2050_v48 = vld [vmem:[%s2518_s2 + $0x150] sm:$0xff]  }
   0xe   :  { %1768 = vmatprep.subr.bf16.mxu1 %v2023_v13  ;;  %647 = vmatprep.mubr.bf16.mxu0 %v1642_v36  ;;  %v2043_v41 = vld [vmem:[%s2518_s2 + $0x1c0] sm:$0xff]   ;;  %v2047_v45 = vld [vmem:[%s2518_s2 + $0x1c8] sm:$0xff]   ;;  %v2051_v49 = vld [vmem:[%s2518_s2 + $0x1d0] sm:$0xff]  }
   0xf   :  { %688 = vmatprep.mubr.bf16.mxu1 %v1644_v39  ;;  %v2044_v42 = vld [vmem:[%s2518_s2 + $0x100] sm:$0xff]   ;;  %v2048_v46 = vld [vmem:[%s2518_s2 + $0x108] sm:$0xff]   ;;  %v2052_v50 = vld [vmem:[%s2518_s2 + $0x110] sm:$0xff]  }
  0x10   :  { %1747 = vmatpush3.bf16.msra.mxu0 %v2024_v14  ;;  %v2045_v43 = vld [vmem:[%s2518_s2 + $0x180] sm:$0xff]   ;;  %v2049_v47 = vld [vmem:[%s2518_s2 + $0x188] sm:$0xff]   ;;  %v2053_v51 = vld [vmem:[%s2518_s2 + $0x190] sm:$0xff]  }
  0x11   :  { %1769 = vmatpush3.bf16.msra.mxu1 %v2025_v15  ;;  %1748 = vmatprep.subr.bf16.mxu0 %v2026_v16  ;;  %v2054_v52 = vld [vmem:[%s2518_s2 + $0x158] sm:$0xff]   ;;  %v2058_v56 = vld [vmem:[%s2518_s2 + $0x160] sm:$0xff]   ;;  %v2062_v60 = vld [vmem:[%s2518_s2 + $0x168] sm:$0xff]  }
  0x12   :  { %1770 = vmatprep.subr.bf16.mxu1 %v2027_v17  ;;  %v2055_v53 = vld [vmem:[%s2518_s2 + $0x1d8] sm:$0xff]   ;;  %v2059_v57 = vld [vmem:[%s2518_s2 + $0x1e0] sm:$0xff]   ;;  %v2063_v61 = vld [vmem:[%s2518_s2 + $0x1e8] sm:$0xff]  }
  0x13   :  { %v2056_v54 = vld [vmem:[%s2518_s2 + $0x118] sm:$0xff]   ;;  %v2060_v58 = vld [vmem:[%s2518_s2 + $0x120] sm:$0xff]   ;;  %v2064_v62 = vld [vmem:[%s2518_s2 + $0x128] sm:$0xff]  }
  0x14   :  { %1749 = vmatpush3.bf16.msra.mxu0 %v2028_v18  ;;  %v2057_v55 = vld [vmem:[%s2518_s2 + $0x198] sm:$0xff]   ;;  %v2061_v59 = vld [vmem:[%s2518_s2 + $0x1a0] sm:$0xff]   ;;  %v2065_v63 = vld [vmem:[%s2518_s2 + $0x1a8] sm:$0xff]  }
  0x15   :  { %1771 = vmatpush3.bf16.msra.mxu1 %v2029_v19  ;;  %1750 = vmatprep.subr.bf16.mxu0 %v2030_v20  ;;  %v2066_v0 = vld [vmem:[%s2518_s2 + $0x170] sm:$0xff]   ;;  %v2070_v4 = vld [vmem:[%s2518_s2 + $0x178] sm:$0xff]   ;;  %v779_v16 = vld [vmem:[%s2520_s1] sm:$0xff] }
  0x16   :  { %1772 = vmatprep.subr.bf16.mxu1 %v2031_v21  ;;  %v2067_v1 = vld [vmem:[%s2518_s2 + $0x1f0] sm:$0xff]   ;;  %v2071_v5 = vld [vmem:[%s2518_s2 + $0x1f8] sm:$0xff]   ;;  %v867_v17 = vld [vmem:[%s2521_s4 + $0x20] sm:$0xff] }
  0x17   :  { %v2068_v2 = vld [vmem:[%s2518_s2 + $0x130] sm:$0xff]   ;;  %v2072_v6 = vld [vmem:[%s2518_s2 + $0x138] sm:$0xff]   ;;  %v868_v18 = vld [vmem:[%s2521_s4 + $0x28] sm:$0xff] }
  0x18   :  { %1751 = vmatpush3.bf16.msra.mxu0 %v2032_v22  ;;  %v2069_v3 = vld [vmem:[%s2518_s2 + $0x1b0] sm:$0xff]   ;;  %v2073_v7 = vld [vmem:[%s2518_s2 + $0x1b8] sm:$0xff]   ;;  %v1958_v20 = vpack.c.bf16 %v868_v18, %v867_v17  ;;  %v1720_v17 = vld [vmem:[%s2523_s5 + $0x1] ss:$0 sm:$0xff] }
  0x19   :  { %1773 = vmatpush3.bf16.msra.mxu1 %v2033_v23  ;;  %1752 = vmatprep.subr.bf16.mxu0 %v2034_v24  ;;  %v50_v8 = vld [vmem:[%s2519_s0 + $0x10] sm:$0xff]  ;;  %v51_v12 = vld [vmem:[%s2519_s0 + $0x18] sm:$0xff] }
  0x1a   :  { %1774 = vmatprep.subr.bf16.mxu1 %v2035_v25  ;;  %v54_v9 = vld [vmem:[%s2519_s0 + $0x30] sm:$0xff]  ;;  %v55_v13 = vld [vmem:[%s2519_s0 + $0x38] sm:$0xff]  ;;  %v1640_v25 = vld [vmem:[%s2522_s3] ss:$0 sm:$0xff] }
  0x1b   :  { %v1645_v10 = vcombine.low %v50_v8, %v54_v9  ;;  %v1646_v11 = vcombine.high %v50_v8, %v54_v9  ;;  %v1647_v14 = vcombine.low %v51_v12, %v55_v13  ;;  %v1648_v15 = vcombine.high %v51_v12, %v55_v13  ;;  %v869_v19 = vld [vmem:[%s2521_s4 + $0x30] sm:$0xff]  ;;  %v870_v21 = vld [vmem:[%s2521_s4 + $0x38] sm:$0xff] }
  0x1c   :  { %1753 = vmatpush3.bf16.msra.mxu0 %v2036_v26  ;;  %v1962_v22 = vpack.c.bf16 %v870_v21, %v869_v19 }
  0x1d   :  { %1775 = vmatpush3.bf16.msra.mxu1 %v2037_v27  ;;  %1754 = vmatprep.subr.bf16.mxu0 %v2038_v28 }
  0x1e   :  { %1776 = vmatprep.subr.bf16.mxu1 %v2039_v29 }
  0x20   :  { %1755 = vmatpush3.bf16.msra.mxu0 %v2040_v30 }
  0x21   :  { %1777 = vmatpush3.bf16.msra.mxu1 %v2041_v31  ;;  %1784 = vmatprep.subr.bf16.mxu0 %v2042_v40 }
  0x22   :  { %1806 = vmatprep.subr.bf16.mxu1 %v2043_v41 }
  0x23   :  { %648 = vmatmul.mubr.bf16.vlgmr.msra.gmra.mrb[0].mxu0 %v1641_v35 }
  0x24   :  { %689 = vmatmul.mubr.bf16.vlgmr.msra.gmra.mrb[0].mxu1 %v1643_v38  ;;  %1785 = vmatpush3.bf16.msra.mxu0 %v2044_v42 }
  0x25   :  { %1807 = vmatpush3.bf16.msra.mxu1 %v2045_v43  ;;  %1786 = vmatprep.subr.bf16.mxu0 %v2046_v44 }
  0x26   :  { %1808 = vmatprep.subr.bf16.mxu1 %v2047_v45  ;;  %729 = vmatprep.mubr.bf16.mxu0 %v1646_v11 }
  0x27   :  { %770 = vmatprep.mubr.bf16.mxu1 %v1648_v15 }
  0x28   :  { %1787 = vmatpush3.bf16.msra.mxu0 %v2048_v46 }
  0x29   :  { %1809 = vmatpush3.bf16.msra.mxu1 %v2049_v47  ;;  %1788 = vmatprep.subr.bf16.mxu0 %v2050_v48 }
  0x2a   :  { %1810 = vmatprep.subr.bf16.mxu1 %v2051_v49 }
  0x2c   :  { %1789 = vmatpush3.bf16.msra.mxu0 %v2052_v50 }
  0x2d   :  { %1811 = vmatpush3.bf16.msra.mxu1 %v2053_v51  ;;  %1790 = vmatprep.subr.bf16.mxu0 %v2054_v52 }
  0x2e   :  { %1812 = vmatprep.subr.bf16.mxu1 %v2055_v53 }
  0x30   :  { %1791 = vmatpush3.bf16.msra.mxu0 %v2056_v54 }
  0x31   :  { %1813 = vmatpush3.bf16.msra.mxu1 %v2057_v55  ;;  %1792 = vmatprep.subr.bf16.mxu0 %v2058_v56 }
  0x32   :  { %1814 = vmatprep.subr.bf16.mxu1 %v2059_v57  ;;  %v2395_v57 = vld [vmem:[%s2520_s1 + $0x8] sm:$0xff] }
  0x34   :  { %1793 = vmatpush3.bf16.msra.mxu0 %v2060_v58  ;;  %v863_v58 = vld [vmem:[%s2521_s4] sm:$0xff] }
  0x35   :  { %1815 = vmatpush3.bf16.msra.mxu1 %v2061_v59  ;;  %1794 = vmatprep.subr.bf16.mxu0 %v2062_v60  ;;  %v864_v59 = vld [vmem:[%s2521_s4 + $0x8] sm:$0xff] }
  0x36   :  { %1816 = vmatprep.subr.bf16.mxu1 %v2063_v61  ;;  %v1966_v60 = vpack.c.bf16 %v864_v59, %v863_v58  ;;  %v865_v61 = vld [vmem:[%s2521_s4 + $0x10] sm:$0xff] }
  0x38   :  { %1795 = vmatpush3.bf16.msra.mxu0 %v2064_v62  ;;  %v866_v62 = vld [vmem:[%s2521_s4 + $0x18] sm:$0xff] }
  0x39   :  { %1817 = vmatpush3.bf16.msra.mxu1 %v2065_v63  ;;  %1796 = vmatprep.subr.bf16.mxu0 %v2066_v0 }
  0x3a   :  { %1818 = vmatprep.subr.bf16.mxu1 %v2067_v1  ;;  %v1970_v1 = vpack.c.bf16 %v866_v62, %v865_v61 }
  0x3c   :  { %1797 = vmatpush3.bf16.msra.mxu0 %v2068_v2  ;;  %v1719_v2 = vld [vmem:[%s2523_s5] ss:$0 sm:$0xff] }
  0x3d   :  { %1819 = vmatpush3.bf16.msra.mxu1 %v2069_v3  ;;  %1798 = vmatprep.subr.bf16.mxu0 %v2070_v4 }
  0x3e   :  { %1820 = vmatprep.subr.bf16.mxu1 %v2071_v5 }
  0x40   :  { %1799 = vmatpush3.bf16.msra.mxu0 %v2072_v6 }
  0x41   :  { %1821 = vmatpush3.bf16.msra.mxu1 %v2073_v7 }
  0x42   :  { %1959 = vmatprep.subr.bf16.mxu1 %v1958_v20 }
  0x43   :  { %730 = vmatmul.mubr.bf16.vlgmr.msra.gmra.mrb[4].mxu0 %v1645_v10 }
  0x44   :  { %771 = vmatmul.mubr.bf16.vlgmr.msra.gmra.mrb[4].mxu1 %v1647_v14  ;;  %1877 = vmatprep.mubr.msk.f32.mxu0 %vm781_vm0, %v779_v16 }
  0x45   :  { %1961 = vmatpush3.bf16.msra.mxu1 %v1958_v20 }
  0x46   :  { %1963 = vmatprep.subr.bf16.mxu1 %v1962_v22 }
  0x49   :  { %1965 = vmatpush3.bf16.msra.mxu1 %v1962_v22  ;;  %v1721_v22 = vld [vmem:[%s2523_s5 + $0x2] ss:$0 sm:$0xff] }
  0x4a   :  { %1967 = vmatprep.subr.bf16.mxu1 %v1966_v60 }
  0xf6   :  { %v1756_v23 = vpop.f32.mrb[0].mxu0 }
  0xf7   :  { %v1778_v24 = vpop.f32.mrb[0].mxu1  ;;  %v1757_v26 = vpop.f32.mrb[1].mxu0 }
  0xf8   :  { %v1758_v27 = vadd.f32 %v1757_v26, %v1756_v23  ;;  %v1779_v28 = vpop.f32.mrb[1].mxu1  ;;  %v1759_v29 = vpop.f32.mrb[2].mxu0 }
  0xf9   :  { %v1780_v30 = vadd.f32 %v1779_v28, %v1778_v24  ;;  %v1781_v31 = vpop.f32.mrb[2].mxu1  ;;  %v1760_v32 = vpop.f32.mrb[3].mxu0  ;;  %v1153_v28 = vld [vmem:[%s2524_s6 + $0x28] sm:$0xff] }
  0xfa   :  { %v650_v33 = vadd.f32 %v1758_v27, %v1640_v25  ;;  %v1761_v34 = vadd.f32 %v1760_v32, %v1759_v29  ;;  %v1782_v35 = vpop.f32.mrb[3].mxu1  ;;  %v1152_v27 = vld [vmem:[%s2524_s6 + $0x20] sm:$0xff] }
  0xfb   :  { %v1783_v36 = vadd.f32 %v1782_v35, %v1781_v31  ;;  %v1978_v32 = vpack.c.bf16 %v1153_v28, %v1152_v27 }
  0xfc   :  { %v691_v37 = vadd.f32 %v1780_v30, %v650_v33  ;;  %v653_v38 = vadd.f32 %v1761_v34, %v1640_v25  ;;  %v1154_v33 = vld [vmem:[%s2524_s6 + $0x30] sm:$0xff]  ;;  %v1155_v34 = vld [vmem:[%s2524_s6 + $0x38] sm:$0xff] }
  0xfd   :  { %v1982_v35 = vpack.c.bf16 %v1155_v34, %v1154_v33 }
  0xfe   :  { %v694_v39 = vadd.f32 %v1783_v36, %v653_v38  ;;  %v1148_v36 = vld [vmem:[%s2524_s6] sm:$0xff] }
 0x116   :  { %v1800_v40 = vpop.f32.mrb[4].mxu0 }
 0x117   :  { %v1822_v41 = vpop.f32.mrb[4].mxu1  ;;  %v1801_v42 = vpop.f32.mrb[5].mxu0 }
 0x118   :  { %v1802_v43 = vadd.f32 %v1801_v42, %v1800_v40  ;;  %v1823_v44 = vpop.f32.mrb[5].mxu1  ;;  %v1803_v45 = vpop.f32.mrb[6].mxu0  ;;  %v1151_v40 = vld [vmem:[%s2524_s6 + $0x18] sm:$0xff] }
 0x119   :  { %v1824_v46 = vadd.f32 %v1823_v44, %v1822_v41  ;;  %v1825_v47 = vpop.f32.mrb[6].mxu1  ;;  %v1804_v48 = vpop.f32.mrb[7].mxu0  ;;  %v1728_v44 = vld [vmem:[%s2525_s7] ss:$0 sm:$0xff] }
 0x11a   :  { %v732_v49 = vadd.f32 %v1802_v43, %v691_v37  ;;  %v1805_v50 = vadd.f32 %v1804_v48, %v1803_v45  ;;  %v1826_v51 = vpop.f32.mrb[7].mxu1  ;;  %v1149_v37 = vld [vmem:[%s2524_s6 + $0x8] sm:$0xff] }
 0x11b   :  { %v1827_v52 = vadd.f32 %v1826_v51, %v1825_v47  ;;  %v1986_v38 = vpack.c.bf16 %v1149_v37, %v1148_v36 }
 0x11c   :  { %v773_v53 = vadd.f32 %v1824_v46, %v732_v49  ;;  %v735_v54 = vadd.f32 %v1805_v50, %v694_v39  ;;  %v1150_v39 = vld [vmem:[%s2524_s6 + $0x10] sm:$0xff] }
 0x11d   :  { %v1990_v43 = vpack.c.bf16 %v1151_v40, %v1150_v39 }
 0x11e   :  { %v776_v55 = vadd.f32 %v1827_v52, %v735_v54  ;;  %v1358_v54 = vld [vmem:[%s2526_s8 + $0x8] sm:$0xff] }
 0x120   :  { %v1954_v56 = vpack.c.bf16 %v776_v55, %v773_v53 }
 0x122   :  { %1955 = vmatprep.subr.bf16.mxu0 %v1954_v56 }
 0x123   :  { %1957 = vmatpush3.bf16.msra.mxu0 %v1954_v56  ;;  %v1359_v56 = vld [vmem:[%s2526_s8 + $0x10] sm:$0xff] }
 0x126   :  { %1878 = vmatmul.mubr.msk.f32.vlgmr.msra.gmra.mrb[8].mxu0 %vm781_vm0, %v2395_v57 }
 0x127   :  { %1906 = vmatprep.mubr.msk.f32.mxu0 %vm781_vm0, %v779_v16 }
 0x1f9   :  { %v1879_v63 = vpop.f32.mrb[8].mxu0 }
 0x1fa   :  { %v854_v0 = vpop.f32.mrb[9].mxu0 }
 0x1fb   :  { %1888 = vmatprep.mubr.msk.f32.mxu1 %vm871_vm1, %v854_v0 }
 0x1fc   :  { %1889 = vmatmul.mubr.msk.f32.vlgmr.msra.gmra.mrb[8].mxu1 %vm871_vm1, %v1879_v63 }
 0x1fd   :  { %1969 = vmatpush3.bf16.msra.mxu1 %v1966_v60  ;;  %1899 = vmatprep.mubr.msk.f32.mxu1 %vm871_vm1, %v773_v53 }
 0x1fe   :  { %1971 = vmatprep.subr.bf16.mxu1 %v1970_v1 }
 0x201   :  { %1973 = vmatpush3.bf16.msra.mxu1 %v1970_v1  ;;  %v1729_v1 = vld [vmem:[%s2525_s7 + $0x1] ss:$0 sm:$0xff] }
 0x204   :  { %1900 = vmatmul.mubr.msk.f32.vlgmr.msra.gmra.mrb[8].mxu1 %vm871_vm1, %v776_v55 }
 0x2d7   :  { %v1901_v3 = vpop.f32.mrb[8].mxu1 }
 0x2d8   :  { %v1025_v4 = vpop.f32.mrb[9].mxu1  ;;  %v1040_v5 = vadd.f32 %v1901_v3, %v1719_v2 }
 0x2d9   :  { %v1039_v6 = vadd.f32 %v1719_v2, %v1025_v4  ;;  %v1730_v4 = vld [vmem:[%s2525_s7 + $0x2] ss:$0 sm:$0xff] }
 0x2da   :  { %v1042_v9 = vmul.f32 %v1040_v5, %v1040_v5 }
 0x2db   :  { %v1041_v7 = vmul.f32 %v1039_v6, %v1039_v6 }
 0x2dc   :  { %v1046_v10 = vsel %vm871_vm1, %v1042_v9, 0.0 }
 0x2dd   :  { %v1043_v8 = vsel %vm871_vm1, %v1041_v7, 0.0 }
 0x2de   :  { %1044 = vadd.xlane.f32.xlu0 %v1043_v8 }
 0x2e2   :  { %1047 = vadd.xlane.f32.xlu0 %v1046_v10 }
 0x36b   :  { %v1045_v11 = vpop.xlane.xlu0 %1044 }
 0x36c   :  { %v1049_v12 = vmax.f32 %v1045_v11, 1e-24 }
 0x36e   :  { %2074 = vrsqrt.f32 %v1049_v12 }
 0x36f   :  { %v1048_v13 = vpop.xlane.xlu0 %1047 }
 0x370   :  { %v1050_v14 = vmax.f32 %v1048_v13, 1e-24  ;;  %v1451_v13 = vld [vmem:[%s2527_s10] sm:$0xff] }
 0x372   :  { %2076 = vrsqrt.f32 %v1050_v14  ;;  %v1452_v14 = vld [vmem:[%s2527_s10 + $0x8] sm:$0xff] }
 0x378   :  { %v2075_v15 = vpop.eup %2074 }
 0x379   :  { %v1053_v16 = vmul.f32 %v2075_v15, %v1039_v6  ;;  %v2002_v15 = vpack.c.bf16 %v1452_v14, %v1451_v13 }
 0x37b   :  { %v1055_v18 = vmax.f32 %v1053_v16, 0.0  ;;  %v1731_v16 = vld [vmem:[%s2528_s9] ss:$0 sm:$0xff] }
 0x37c   :  { %v2077_v19 = vpop.eup %2076 }
 0x37d   :  { %v1054_v20 = vmul.f32 %v2077_v19, %v1040_v5  ;;  %v1062_v21 = vmul.f32 %v1720_v17, %v1055_v18 }
 0x37f   :  { %v1056_v23 = vmax.f32 %v1054_v20, 0.0  ;;  %v1069_v25 = vadd.f32 %v1721_v22, %v1062_v21 }
 0x381   :  { %v1063_v24 = vmul.f32 %v1720_v17, %v1056_v23  ;;  %v2433_v29 = vadd.f32 %v1069_v25, %v773_v53  ;;  %v1357_v53 = vld [vmem:[%s2526_s8] sm:$0xff] }
 0x382   :  { %v1543_v23 = vld [vmem:[%s2529_s12] sm:$0xff] }
 0x383   :  { %v1070_v26 = vadd.f32 %v1721_v22, %v1063_v24  ;;  %v1734_v24 = vld [vmem:[%s2530_s11] ss:$0 sm:$0xff] }
 0x385   :  { %v2435_v30 = vadd.f32 %v1070_v26, %v776_v55  ;;  %v1994_v55 = vpack.c.bf16 %v1358_v54, %v1357_v53 }
 0x387   :  { %v1974_v31 = vpack.c.bf16 %v2435_v30, %v2433_v29  ;;  %1995 = vmatprep.subr.bf16.mxu1 %v1994_v55 }
 0x388   :  { %1997 = vmatpush3.bf16.msra.mxu1 %v1994_v55 }
 0x389   :  { %1975 = vmatprep.subr.bf16.mxu0 %v1974_v31 }
 0x38a   :  { %1977 = vmatpush3.bf16.msra.mxu0 %v1974_v31  ;;  %v1737_v31 = vld [vmem:[%s2531_s13] ss:$0 sm:$0xff] }
 0x38b   :  { %1979 = vmatprep.subr.bf16.mxu0 %v1978_v32 }
 0x38d   :  { %1907 = vmatmul.mubr.msk.f32.vlgmr.msra.gmra.mrb[10].mxu0 %vm781_vm0, %v2395_v57  ;;  %v1360_v57 = vld [vmem:[%s2526_s8 + $0x18] sm:$0xff] }
 0x38e   :  { %1981 = vmatpush3.bf16.msra.mxu0 %v1978_v32  ;;  %v1998_v58 = vpack.c.bf16 %v1360_v57, %v1359_v56 }
 0x38f   :  { %1983 = vmatprep.subr.bf16.mxu0 %v1982_v35 }
 0x390   :  { %1999 = vmatprep.subr.bf16.mxu1 %v1998_v58 }
 0x391   :  { %2001 = vmatpush3.bf16.msra.mxu1 %v1998_v58 }
 0x392   :  { %1985 = vmatpush3.bf16.msra.mxu0 %v1982_v35  ;;  %2003 = vmatprep.subr.bf16.mxu1 %v2002_v15 }
 0x393   :  { %1987 = vmatprep.subr.bf16.mxu0 %v1986_v38 }
 0x460   :  { %v1908_v41 = vpop.f32.mrb[10].mxu0 }
 0x461   :  { %v1139_v42 = vpop.f32.mrb[11].mxu0 }
 0x462   :  { %1917 = vmatprep.mubr.msk.f32.mxu0 %vm871_vm1, %v1139_v42 }
 0x463   :  { %1918 = vmatmul.mubr.msk.f32.vlgmr.msra.gmra.mrb[12].mxu0 %vm871_vm1, %v1908_v41 }
 0x464   :  { %1989 = vmatpush3.bf16.msra.mxu0 %v1986_v38  ;;  %1928 = vmatprep.mubr.msk.f32.mxu0 %vm871_vm1, %v2433_v29 }
 0x465   :  { %1991 = vmatprep.subr.bf16.mxu0 %v1990_v43 }
 0x468   :  { %1993 = vmatpush3.bf16.msra.mxu0 %v1990_v43 }
 0x469   :  { %1949 = vmatprep.subr.mxu0 %v1543_v23 }
 0x46b   :  { %1929 = vmatmul.mubr.msk.f32.vlgmr.msra.gmra.mrb[12].mxu0 %vm871_vm1, %v2435_v30 }
 0x46c   :  { %1950 = vmatpush3.msra.mxu0 %v1543_v23 }
 0x53e   :  { %v1930_v45 = vpop.f32.mrb[12].mxu0 }
 0x53f   :  { %v1309_v46 = vpop.f32.mrb[13].mxu0  ;;  %v1324_v47 = vadd.f32 %v1930_v45, %v1728_v44 }
 0x540   :  { %v1323_v48 = vadd.f32 %v1728_v44, %v1309_v46 }
 0x541   :  { %v1326_v51 = vmul.f32 %v1324_v47, %v1324_v47 }
 0x542   :  { %v1325_v49 = vmul.f32 %v1323_v48, %v1323_v48 }
 0x543   :  { %v1330_v52 = vsel %vm871_vm1, %v1326_v51, 0.0 }
 0x544   :  { %v1327_v50 = vsel %vm871_vm1, %v1325_v49, 0.0 }
 0x545   :  { %1328 = vadd.xlane.f32.xlu1 %v1327_v50 }
 0x549   :  { %1331 = vadd.xlane.f32.xlu1 %v1330_v52 }
 0x5d2   :  { %v1329_v59 = vpop.xlane.xlu1 %1328 }
 0x5d3   :  { %v1333_v60 = vmax.f32 %v1329_v59, 1e-24 }
 0x5d5   :  { %2078 = vrsqrt.f32 %v1333_v60 }
 0x5d6   :  { %v1332_v61 = vpop.xlane.xlu1 %1331 }
 0x5d7   :  { %v1334_v62 = vmax.f32 %v1332_v61, 1e-24 }
 0x5d9   :  { %2080 = vrsqrt.f32 %v1334_v62 }
 0x5df   :  { %v2079_v63 = vpop.eup %2078 }
 0x5e0   :  { %v1337_v0 = vmul.f32 %v2079_v63, %v1323_v48 }
 0x5e2   :  { %v1339_v2 = vmax.f32 %v1337_v0, 0.0 }
 0x5e3   :  { %v2081_v3 = vpop.eup %2080 }
 0x5e4   :  { %v1338_v5 = vmul.f32 %v2081_v3, %v1324_v47  ;;  %v1346_v6 = vmul.f32 %v1729_v1, %v1339_v2 }
 0x5e6   :  { %v1340_v7 = vmax.f32 %v1338_v5, 0.0  ;;  %v1353_v8 = vadd.f32 %v1730_v4, %v1346_v6 }
 0x5e8   :  { %v1347_v9 = vmul.f32 %v1729_v1, %v1340_v7  ;;  %v1355_v10 = vadd.f32 %v1353_v8, %v2433_v29 }
 0x5ea   :  { %1939 = vmatprep.mubr.msk.f32.mxu1 %vm871_vm1, %v1355_v10  ;;  %v1354_v11 = vadd.f32 %v1730_v4, %v1347_v9 }
 0x5ec   :  { %v1356_v12 = vadd.f32 %v1354_v11, %v2435_v30 }
 0x5ee   :  { %1940 = vmatmul.mubr.msk.f32.vlgmr.msra.gmra.mrb[10].mxu1 %vm871_vm1, %v1356_v12 }
 0x5ef   :  { %2005 = vmatpush3.bf16.msra.mxu1 %v2002_v15 }
 0x6c1   :  { %v1941_v17 = vpop.f32.mrb[10].mxu1 }
 0x6c2   :  { %v1446_v18 = vadd.f32 %v1941_v17, %v1731_v16  ;;  %v1440_v19 = vpop.f32.mrb[11].mxu1 }
 0x6c3   :  { %v1441_v20 = vadd.f32 %v1731_v16, %v1440_v19 }
 0x6c4   :  { %v1450_v22 = vmax.f32 %v1446_v18, 0.0 }
 0x6c5   :  { %v1449_v21 = vmax.f32 %v1441_v20, 0.0 }
 0x6c7   :  { %1946 = vmatprep.mubr.msk.f32.mxu1 %vm781_vm0, %v1449_v21 }
 0x6c8   :  { %1947 = vmatmul.mubr.msk.f32.vlgmr.msra.gmra.mrb[12].mxu1 %vm781_vm0, %v1450_v22 }
 0x79b   :  { %v1948_v25 = vpop.f32.mrb[12].mxu1 }
 0x79c   :  { %v1538_v26 = vadd.f32 %v1948_v25, %v1734_v24  ;;  %v1532_v27 = vpop.f32.mrb[13].mxu1 }
 0x79d   :  { %v1533_v28 = vadd.f32 %v1734_v24, %v1532_v27 }
 0x79e   :  { %v1542_v30 = vmax.f32 %v1538_v26, 0.0 }
 0x79f   :  { %v1541_v29 = vmax.f32 %v1533_v28, 0.0 }
 0x7a1   :  { %1951 = vmatprep.mubr.msk.f32.mxu0 %vm1551_vm2, %v1541_v29 }
 0x7a2   :  { %1952 = vmatmul.mubr.msk.f32.vlgmr.msra.gmra.mrb[14].mxu0 %vm1551_vm2, %v1542_v30 }
 0x875   :  { %v1953_v32 = vpop.f32.mrb[14].mxu0 }
 0x876   :  { %v1630_v33 = vadd.f32 %v1953_v32, %v1737_v31  ;;  %v1624_v34 = vpop.f32.mrb[15].mxu0 }
 0x877   :  { %v1625_v35 = vadd.f32 %v1737_v31, %v1624_v34 }
 0x878   :  { %1635 = vst.msk [vmem:[%s2532_s14 + $0x8] sm:$0xff] %vm1633_vm3, %v1630_v33 }
 0x879   :  { %1634 = vst.msk [vmem:[%s2532_s14] sm:$0xff] %vm1633_vm3, %v1625_v35 }

</bundles_post_ra>
